<compile_context>
chip_gen: v5e
topology: v5e:2x2
jax: 0.10.0
libtpu: 0.0.40
codegen_flags: <defaults>
</compile_context>

<pallas_src>
import numpy as np
import jax
import jax.numpy as jnp
from jax import lax
from jax.experimental import pallas as pl
from jax.experimental.pallas import tpu as pltpu


# ------------------------------ tiling policy -------------------------------

def _choose_tiling(B, C, HW, hw_tile=None):
    """Pick (b_blk, t_hw, n_hw, needs_mask) so VMEM use is bounded on all gens."""
    if hw_tile is None:
        # ~1 MiB of f32 input per tile (0.5–2 MiB sweet spot), lane aligned,
        # capped at 64K lanes per class row.
        hw_tile = max(512, min((((1 << 20) // (4 * C)) // 128) * 128, 1 << 16))
    if HW <= hw_tile:
        t_hw, n_hw, needs_mask = HW, 1, False
    else:
        t_hw = hw_tile
        n_hw = -(-HW // t_hw)
        needs_mask = (HW % t_hw) != 0
    if n_hw > 1:
        assert t_hw % 128 == 0, "HW tile must be a multiple of 128 when tiling"
    # Collapse small batches into one grid step (grid is a sequential loop on a
    # TC; ~0.35 us fixed overhead per step dwarfs tiny workloads).
    if n_hw == 1 and B <= 8 and (B * C * HW * 4) <= (2 << 20):
        b_blk = B
    else:
        b_blk = 1
    return b_blk, t_hw, n_hw, needs_mask


# ------------------------------ Pallas kernel --------------------------------

def _make_partials_kernel(hw_total, t_hw, apply_softmax, needs_mask):
    def kernel(x_ref, t_ref, out_ref):
        # x_ref: (B_BLK, C, T_HW) float   t_ref: (B_BLK, 1, T_HW) int32
        # out_ref: (B_BLK, 3*C, 128) f32 — resident accumulator across hw axis.
        b_blk, n_cls, t = x_ref.shape

        @pl.when(pl.program_id(1) == 0)
        def _init():
            out_ref[...] = jnp.zeros_like(out_ref)

        # Hoisted constants (shared across the unrolled batch loop).
        cls = lax.broadcasted_iota(jnp.int32, (n_cls, t), 0)
        ones = jnp.ones((t, 128), jnp.float32)
        if needs_mask:
            lane = lax.broadcasted_iota(jnp.int32, (n_cls, t), 1)
            valid = (pl.program_id(1) * t_hw + lane) < hw_total

        for b in range(b_blk):                      # small, statically unrolled
            x = x_ref[b].astype(jnp.float32)        # (C, T)
            if apply_softmax:                       # fused softmax over classes
                x = x - jnp.max(x, axis=0, keepdims=True)
                x = jnp.exp(x)
                x = x / jnp.sum(x, axis=0, keepdims=True)
            hit = t_ref[b] == cls                   # (C, T) bool (no f32 onehot mul)
            if needs_mask:                          # zero padded tail lanes
                x = jnp.where(valid, x, 0.0)
                hit = jnp.logical_and(hit, valid)
            stacked = jnp.concatenate(
                [jnp.where(hit, x, 0.0),            # -> I rows
                 x * x,                             # -> Z rows
                 hit.astype(jnp.float32)],          # -> Y rows
                axis=0)                             # (3C, T)
            # Lane reduction on the MXU: every output column holds the sum.
            out_ref[b] += jnp.dot(stacked, ones,
                                  preferred_element_type=jnp.float32)

    return kernel


def dice_partials(inp_flat, tgt_flat, apply_softmax=False, hw_tile=None):
    """inp_flat: (B, C, HW) f32/bf16, tgt_flat: (B, 1, HW) i32 -> I, Z, Y (B, C)."""
    B, C, HW = inp_flat.shape
    b_blk, t_hw, n_hw, needs_mask = _choose_tiling(B, C, HW, hw_tile)

    kernel = _make_partials_kernel(HW, t_hw, apply_softmax, needs_mask)
    out = pl.pallas_call(
        kernel,
        out_shape=jax.ShapeDtypeStruct((B, 3 * C, 128), jnp.float32),
        grid=(B // b_blk, n_hw),
        in_specs=[
            pl.BlockSpec((b_blk, C, t_hw), lambda b, h: (b, 0, h)),
            pl.BlockSpec((b_blk, 1, t_hw), lambda b, h: (b, 0, h)),
        ],
        out_specs=pl.BlockSpec((b_blk, 3 * C, 128), lambda b, h: (b, 0, 0)),
        compiler_params=pltpu.CompilerParams(
            dimension_semantics=("parallel", "arbitrary"),
            vmem_limit_bytes=32 * 1024 * 1024),
    )(inp_flat, tgt_flat)

    partials = out[:, :, 0]                        # all 128 lanes are identical
    return partials[:, :C], partials[:, C:2 * C], partials[:, 2 * C:]


# ---------------------------- febs_loss forward ------------------------------

def febs_loss_forward(inputs, target, attr, n_classes, n_attr=3, gamma=0.0,
                      weight=None, softmax=False, hw_tile=None):
    """JAX/Pallas port of febs_loss.forward.

    inputs: (B, C, H, W) float, target: (B, H, W) int labels, attr: (B,) int.
    The optional softmax is fused into the Pallas kernel (single HBM read).
    """
    B, C, H, W = inputs.shape
    assert C == n_classes
    inp_flat = inputs.reshape(B, C, H * W)
    if inp_flat.dtype != jnp.bfloat16:             # bf16 allowed (upcast in-kernel)
        inp_flat = inp_flat.astype(jnp.float32)
    tgt_flat = target.reshape(B, 1, H * W).astype(jnp.int32)

    # Hot-path reductions in the Pallas kernel.
    I, Z, Y = dice_partials(inp_flat, tgt_flat, apply_softmax=softmax,
                            hw_tile=hw_tile)       # each (B, C)

    smooth = 1e-5
    attr = attr.astype(jnp.int32)

    # Per-attribute-group dice sums (absent groups reduce to 0, matching the
    # zeros-initialized tmp_weights of the reference).
    # NOTE: like the PyTorch reference, an attribute group absent from `attr`
    # yields tmp_weights==0 and min/tmp_weights can produce NaN/Inf; semantics
    # are kept identical on purpose.
    group_mask = (attr[:, None] == jnp.arange(n_attr)[None, :]).astype(jnp.float32)
    Ig = group_mask.T @ I                          # (A, C)
    Zg = group_mask.T @ Z
    Yg = group_mask.T @ Y
    dice_g = 1.0 - (2.0 * Ig + smooth) / (Zg + Yg + smooth)
    tmp_weights = jnp.sum(dice_g, axis=1)          # (A,)
    tmp_weights = (jnp.min(tmp_weights) / tmp_weights) ** gamma
    tmp_weights = jnp.tanh(tmp_weights)

    # Final weighted dice: score = inputs[:, i] * tmp_weights[attr][:, None, None]
    w_b = tmp_weights[attr]                        # (B,)
    intersect = jnp.sum(w_b[:, None] * I, axis=0)  # (C,)
    z_sum = jnp.sum((w_b ** 2)[:, None] * Z, axis=0)
    y_sum = jnp.sum(Y, axis=0)
    dice = 1.0 - (2.0 * intersect + smooth) / (z_sum + y_sum + smooth)

    if weight is None:
        weight = jnp.ones((n_classes,), jnp.float32)
    else:
        weight = jnp.asarray(weight, jnp.float32)
    return jnp.sum(dice * weight) / n_classes


# -------------------------------- reference ----------------------------------

def febs_loss_reference(inputs, target, attr, n_classes, n_attr=3, gamma=0.0,
                        weight=None, softmax=False):
    inputs = np.asarray(inputs, np.float64)
    target = np.asarray(target)
    attr = np.asarray(attr)
    if softmax:
        e = np.exp(inputs - inputs.max(axis=1, keepdims=True))
        inputs = e / e.sum(axis=1, keepdims=True)
    onehot = np.stack([(target == i).astype(np.float64) for i in range(n_classes)], axis=1)
    smooth = 1e-5

    def dice(score, tgt):
        inter = np.sum(score * tgt)
        y = np.sum(tgt * tgt)
        z = np.sum(score * score)
        return 1.0 - (2.0 * inter + smooth) / (z + y + smooth)

    tmp_weights = np.zeros(n_attr)
    for x in np.unique(attr):
        ti, tt = inputs[attr == x], onehot[attr == x]
        tmp_weights[x] = sum(dice(ti[:, i], tt[:, i]) for i in range(n_classes))
    tmp_weights = (np.min(tmp_weights) / tmp_weights) ** gamma
    tmp_weights = np.tanh(tmp_weights)

    if weight is None:
        weight = [1] * n_classes
    loss = 0.0
    for i in range(n_classes):
        loss += dice(inputs[:, i] * tmp_weights[attr][:, None, None], onehot[:, i]) * weight[i]
    return loss / n_classes


# ----------------------------------- main ------------------------------------

if __name__ == "__main__":
    n_classes, n_attr, gamma = 4, 3, 0.5

    key = jax.random.PRNGKey(0)
    k1, k2, k3, k4 = jax.random.split(key, 4)

    # Case 1 & 2: B=4, 16x16 -> single grid step (batch collapsed). Case 2
    # exercises the fused in-kernel softmax.
    B, H, W = 4, 16, 16
    logits = jax.random.normal(k1, (B, n_classes, H, W), jnp.float32)
    probs = jax.nn.softmax(logits, axis=1)
    target = jax.random.randint(k2, (B, H, W), 0, n_classes, jnp.int32)
    attr = jnp.array([0, 1, 2, 0], jnp.int32)       # all attribute groups present

    loss1 = jax.block_until_ready(
        febs_loss_forward(probs, target, attr, n_classes, n_attr=n_attr, gamma=gamma))
    ref1 = febs_loss_reference(np.asarray(probs), np.asarray(target), np.asarray(attr),
                               n_classes, n_attr=n_attr, gamma=gamma)
    assert np.isfinite(float(loss1))
    assert np.allclose(float(loss1), float(ref1), rtol=1e-3, atol=1e-5), (float(loss1), float(ref1))

    loss2 = jax.block_until_ready(
        febs_loss_forward(logits, target, attr, n_classes, n_attr=n_attr, gamma=gamma,
                          softmax=True))
    ref2 = febs_loss_reference(np.asarray(logits), np.asarray(target), np.asarray(attr),
                               n_classes, n_attr=n_attr, gamma=gamma, softmax=True)
    assert np.allclose(float(loss2), float(ref2), rtol=1e-3, atol=1e-5), (float(loss2), float(ref2))

    # Case 3: odd spatial size with a forced small HW tile -> exercises the
    # tiled-grid path (grid hw axis > 1) with tail-lane masking.
    H2, W2 = 18, 18
    logits3 = jax.random.normal(k3, (B, n_classes, H2, W2), jnp.float32)
    probs3 = jax.nn.softmax(logits3, axis=1)
    target3 = jax.random.randint(k4, (B, H2, W2), 0, n_classes, jnp.int32)
    loss3 = jax.block_until_ready(
        febs_loss_forward(probs3, target3, attr, n_classes, n_attr=n_attr, gamma=gamma,
                          hw_tile=128))
    ref3 = febs_loss_reference(np.asarray(probs3), np.asarray(target3), np.asarray(attr),
                               n_classes, n_attr=n_attr, gamma=gamma)
    assert np.allclose(float(loss3), float(ref3), rtol=1e-3, atol=1e-5), (float(loss3), float(ref3))

    print("KERNEL_OK")
</pallas_src>

<mosaic_0001>
module attributes {stable_mosaic.version = 11 : i64} {
  func.func @kernel(%arg0: i32, %arg1: i32, %arg2: memref<4x4x256xf32, #tpu.memory_space<vmem>>, %arg3: memref<4x1x256xi32, #tpu.memory_space<vmem>>, %arg4: memref<4x12x128xf32, #tpu.memory_space<vmem>>) attributes {dimension_semantics = [#tpu.dimension_semantics<parallel>, #tpu.dimension_semantics<arbitrary>], iteration_bounds = array<i64: 1, 1>, scalar_prefetch = 0 : i64, scratch_operands = 0 : i64, tpu.core_type = #tpu.core_type<tc>, window_params = [{transform_indices = @transform_0, window_bounds = array<i64: 4, 4, 256>}, {transform_indices = @transform_1, window_bounds = array<i64: 4, 1, 256>}, {transform_indices = @transform_2, window_bounds = array<i64: 4, 12, 128>}]} {
    %c0_i32 = arith.constant 0 : i32
    %0 = arith.cmpi eq, %arg1, %c0_i32 : i32
    %1 = arith.extui %0 : i1 to i32
    %c0_i32_0 = arith.constant 0 : i32
    %2 = arith.cmpi ne, %1, %c0_i32_0 : i32
    scf.if %2 {
      %cst_53 = arith.constant 0.000000e+00 : f32
      %81 = vector.broadcast %cst_53 : f32 to vector<4x12x128xf32>
      %c0_54 = arith.constant 0 : index
      %c0_55 = arith.constant 0 : index
      %c0_56 = arith.constant 0 : index
      %82 = vector.load %arg4[%c0_54, %c0_55, %c0_56] : memref<4x12x128xf32, #tpu.memory_space<vmem>>, vector<4x12x128xf32>
      tpu.vector_store %arg4[%c0_54, %c0_55, %c0_56], %81 {strides = array<i32>} : memref<4x12x128xf32, #tpu.memory_space<vmem>>, vector<4x12x128xf32>,
    } else {
    }
    %3 = tpu.iota {dimensions = array<i32: 0>} : vector<4x256xi32>
    %cst = arith.constant 1.000000e+00 : f32
    %4 = vector.broadcast %cst : f32 to vector<256x128xf32>
    %c0 = arith.constant 0 : index
    %c0_1 = arith.constant 0 : index
    %c0_2 = arith.constant 0 : index
    %5 = vector.load %arg2[%c0, %c0_1, %c0_2] : memref<4x4x256xf32, #tpu.memory_space<vmem>>, vector<1x4x256xf32>
    %6 = vector.shape_cast %5 : vector<1x4x256xf32> to vector<4x256xf32>
    %c0_3 = arith.constant 0 : index
    %c0_4 = arith.constant 0 : index
    %c0_5 = arith.constant 0 : index
    %7 = vector.load %arg3[%c0_3, %c0_4, %c0_5] : memref<4x1x256xi32, #tpu.memory_space<vmem>>, vector<1x1x256xi32>
    %8 = vector.shape_cast %7 : vector<1x1x256xi32> to vector<1x256xi32>
    %9 = vector.broadcast %8 : vector<1x256xi32> to vector<4x256xi32>
    %10 = arith.cmpi eq, %9, %3 : vector<4x256xi32>
    %cst_6 = arith.constant 0.000000e+00 : f32
    %11 = vector.broadcast %cst_6 : f32 to vector<4x256xf32>
    %12 = arith.select %10, %6, %11 : vector<4x256xi1>, vector<4x256xf32>
    %13 = arith.mulf %6, %6 : vector<4x256xf32>
    %14 = arith.extui %10 : vector<4x256xi1> to vector<4x256xi32>
    %15 = arith.sitofp %14 : vector<4x256xi32> to vector<4x256xf32>
    %16 = tpu.concatenate %12, %13, %15 in 0 : vector<4x256xf32>, vector<4x256xf32>, vector<4x256xf32> -> vector<12x256xf32>
    %c0_7 = arith.constant 0 : index
    %c0_8 = arith.constant 0 : index
    %c0_9 = arith.constant 0 : index
    %17 = vector.load %arg4[%c0_7, %c0_8, %c0_9] : memref<4x12x128xf32, #tpu.memory_space<vmem>>, vector<1x12x128xf32>
    %18 = vector.shape_cast %17 : vector<1x12x128xf32> to vector<12x128xf32>
    %cst_10 = arith.constant dense<0.000000e+00> : vector<12x128xf32>
    %19 = tpu.matmul %16, %4, %cst_10 {dimension_numbers = #tpu.dot_dimension_numbers<[1], [0], [0], [1], [0, 0, 1, 1], [], []>} : vector<12x256xf32>, vector<256x128xf32>, vector<12x128xf32> -> vector<12x128xf32>
    %20 = arith.addf %18, %19 : vector<12x128xf32>
    %c0_11 = arith.constant 0 : index
    %c0_12 = arith.constant 0 : index
    %c0_13 = arith.constant 0 : index
    %21 = vector.load %arg4[%c0_11, %c0_12, %c0_13] : memref<4x12x128xf32, #tpu.memory_space<vmem>>, vector<1x12x128xf32>
    %22 = vector.shape_cast %21 : vector<1x12x128xf32> to vector<12x128xf32>
    %23 = vector.shape_cast %20 : vector<12x128xf32> to vector<1x12x128xf32>
    tpu.vector_store %arg4[%c0_11, %c0_12, %c0_13], %23 {strides = array<i32>} : memref<4x12x128xf32, #tpu.memory_space<vmem>>, vector<1x12x128xf32>,
    %c1 = arith.constant 1 : index
    %c0_14 = arith.constant 0 : index
    %c0_15 = arith.constant 0 : index
    %24 = vector.load %arg2[%c1, %c0_14, %c0_15] : memref<4x4x256xf32, #tpu.memory_space<vmem>>, vector<1x4x256xf32>
    %25 = vector.shape_cast %24 : vector<1x4x256xf32> to vector<4x256xf32>
    %c1_16 = arith.constant 1 : index
    %c0_17 = arith.constant 0 : index
    %c0_18 = arith.constant 0 : index
    %26 = vector.load %arg3[%c1_16, %c0_17, %c0_18] : memref<4x1x256xi32, #tpu.memory_space<vmem>>, vector<1x1x256xi32>
    %27 = vector.shape_cast %26 : vector<1x1x256xi32> to vector<1x256xi32>
    %28 = vector.broadcast %27 : vector<1x256xi32> to vector<4x256xi32>
    %29 = arith.cmpi eq, %28, %3 : vector<4x256xi32>
    %cst_19 = arith.constant 0.000000e+00 : f32
    %30 = vector.broadcast %cst_19 : f32 to vector<4x256xf32>
    %31 = arith.select %29, %25, %30 : vector<4x256xi1>, vector<4x256xf32>
    %32 = arith.mulf %25, %25 : vector<4x256xf32>
    %33 = arith.extui %29 : vector<4x256xi1> to vector<4x256xi32>
    %34 = arith.sitofp %33 : vector<4x256xi32> to vector<4x256xf32>
    %35 = tpu.concatenate %31, %32, %34 in 0 : vector<4x256xf32>, vector<4x256xf32>, vector<4x256xf32> -> vector<12x256xf32>
    %c1_20 = arith.constant 1 : index
    %c0_21 = arith.constant 0 : index
    %c0_22 = arith.constant 0 : index
    %36 = vector.load %arg4[%c1_20, %c0_21, %c0_22] : memref<4x12x128xf32, #tpu.memory_space<vmem>>, vector<1x12x128xf32>
    %37 = vector.shape_cast %36 : vector<1x12x128xf32> to vector<12x128xf32>
    %cst_23 = arith.constant dense<0.000000e+00> : vector<12x128xf32>
    %38 = tpu.matmul %35, %4, %cst_23 {dimension_numbers = #tpu.dot_dimension_numbers<[1], [0], [0], [1], [0, 0, 1, 1], [], []>} : vector<12x256xf32>, vector<256x128xf32>, vector<12x128xf32> -> vector<12x128xf32>
    %39 = arith.addf %37, %38 : vector<12x128xf32>
    %c1_24 = arith.constant 1 : index
    %c0_25 = arith.constant 0 : index
    %c0_26 = arith.constant 0 : index
    %40 = vector.load %arg4[%c1_24, %c0_25, %c0_26] : memref<4x12x128xf32, #tpu.memory_space<vmem>>, vector<1x12x128xf32>
    %41 = vector.shape_cast %40 : vector<1x12x128xf32> to vector<12x128xf32>
    %42 = vector.shape_cast %39 : vector<12x128xf32> to vector<1x12x128xf32>
    tpu.vector_store %arg4[%c1_24, %c0_25, %c0_26], %42 {strides = array<i32>} : memref<4x12x128xf32, #tpu.memory_space<vmem>>, vector<1x12x128xf32>,
    %c2 = arith.constant 2 : index
    %c0_27 = arith.constant 0 : index
    %c0_28 = arith.constant 0 : index
    %43 = vector.load %arg2[%c2, %c0_27, %c0_28] : memref<4x4x256xf32, #tpu.memory_space<vmem>>, vector<1x4x256xf32>
    %44 = vector.shape_cast %43 : vector<1x4x256xf32> to vector<4x256xf32>
    %c2_29 = arith.constant 2 : index
    %c0_30 = arith.constant 0 : index
    %c0_31 = arith.constant 0 : index
    %45 = vector.load %arg3[%c2_29, %c0_30, %c0_31] : memref<4x1x256xi32, #tpu.memory_space<vmem>>, vector<1x1x256xi32>
    %46 = vector.shape_cast %45 : vector<1x1x256xi32> to vector<1x256xi32>
    %47 = vector.broadcast %46 : vector<1x256xi32> to vector<4x256xi32>
    %48 = arith.cmpi eq, %47, %3 : vector<4x256xi32>
    %cst_32 = arith.constant 0.000000e+00 : f32
    %49 = vector.broadcast %cst_32 : f32 to vector<4x256xf32>
    %50 = arith.select %48, %44, %49 : vector<4x256xi1>, vector<4x256xf32>
    %51 = arith.mulf %44, %44 : vector<4x256xf32>
    %52 = arith.extui %48 : vector<4x256xi1> to vector<4x256xi32>
    %53 = arith.sitofp %52 : vector<4x256xi32> to vector<4x256xf32>
    %54 = tpu.concatenate %50, %51, %53 in 0 : vector<4x256xf32>, vector<4x256xf32>, vector<4x256xf32> -> vector<12x256xf32>
    %c2_33 = arith.constant 2 : index
    %c0_34 = arith.constant 0 : index
    %c0_35 = arith.constant 0 : index
    %55 = vector.load %arg4[%c2_33, %c0_34, %c0_35] : memref<4x12x128xf32, #tpu.memory_space<vmem>>, vector<1x12x128xf32>
    %56 = vector.shape_cast %55 : vector<1x12x128xf32> to vector<12x128xf32>
    %cst_36 = arith.constant dense<0.000000e+00> : vector<12x128xf32>
    %57 = tpu.matmul %54, %4, %cst_36 {dimension_numbers = #tpu.dot_dimension_numbers<[1], [0], [0], [1], [0, 0, 1, 1], [], []>} : vector<12x256xf32>, vector<256x128xf32>, vector<12x128xf32> -> vector<12x128xf32>
    %58 = arith.addf %56, %57 : vector<12x128xf32>
    %c2_37 = arith.constant 2 : index
    %c0_38 = arith.constant 0 : index
    %c0_39 = arith.constant 0 : index
    %59 = vector.load %arg4[%c2_37, %c0_38, %c0_39] : memref<4x12x128xf32, #tpu.memory_space<vmem>>, vector<1x12x128xf32>
    %60 = vector.shape_cast %59 : vector<1x12x128xf32> to vector<12x128xf32>
    %61 = vector.shape_cast %58 : vector<12x128xf32> to vector<1x12x128xf32>
    tpu.vector_store %arg4[%c2_37, %c0_38, %c0_39], %61 {strides = array<i32>} : memref<4x12x128xf32, #tpu.memory_space<vmem>>, vector<1x12x128xf32>,
    %c3 = arith.constant 3 : index
    %c0_40 = arith.constant 0 : index
    %c0_41 = arith.constant 0 : index
    %62 = vector.load %arg2[%c3, %c0_40, %c0_41] : memref<4x4x256xf32, #tpu.memory_space<vmem>>, vector<1x4x256xf32>
    %63 = vector.shape_cast %62 : vector<1x4x256xf32> to vector<4x256xf32>
    %c3_42 = arith.constant 3 : index
    %c0_43 = arith.constant 0 : index
    %c0_44 = arith.constant 0 : index
    %64 = vector.load %arg3[%c3_42, %c0_43, %c0_44] : memref<4x1x256xi32, #tpu.memory_space<vmem>>, vector<1x1x256xi32>
    %65 = vector.shape_cast %64 : vector<1x1x256xi32> to vector<1x256xi32>
    %66 = vector.broadcast %65 : vector<1x256xi32> to vector<4x256xi32>
    %67 = arith.cmpi eq, %66, %3 : vector<4x256xi32>
    %cst_45 = arith.constant 0.000000e+00 : f32
    %68 = vector.broadcast %cst_45 : f32 to vector<4x256xf32>
    %69 = arith.select %67, %63, %68 : vector<4x256xi1>, vector<4x256xf32>
    %70 = arith.mulf %63, %63 : vector<4x256xf32>
    %71 = arith.extui %67 : vector<4x256xi1> to vector<4x256xi32>
    %72 = arith.sitofp %71 : vector<4x256xi32> to vector<4x256xf32>
    %73 = tpu.concatenate %69, %70, %72 in 0 : vector<4x256xf32>, vector<4x256xf32>, vector<4x256xf32> -> vector<12x256xf32>
    %c3_46 = arith.constant 3 : index
    %c0_47 = arith.constant 0 : index
    %c0_48 = arith.constant 0 : index
    %74 = vector.load %arg4[%c3_46, %c0_47, %c0_48] : memref<4x12x128xf32, #tpu.memory_space<vmem>>, vector<1x12x128xf32>
    %75 = vector.shape_cast %74 : vector<1x12x128xf32> to vector<12x128xf32>
    %cst_49 = arith.constant dense<0.000000e+00> : vector<12x128xf32>
    %76 = tpu.matmul %73, %4, %cst_49 {dimension_numbers = #tpu.dot_dimension_numbers<[1], [0], [0], [1], [0, 0, 1, 1], [], []>} : vector<12x256xf32>, vector<256x128xf32>, vector<12x128xf32> -> vector<12x128xf32>
    %77 = arith.addf %75, %76 : vector<12x128xf32>
    %c3_50 = arith.constant 3 : index
    %c0_51 = arith.constant 0 : index
    %c0_52 = arith.constant 0 : index
    %78 = vector.load %arg4[%c3_50, %c0_51, %c0_52] : memref<4x12x128xf32, #tpu.memory_space<vmem>>, vector<1x12x128xf32>
    %79 = vector.shape_cast %78 : vector<1x12x128xf32> to vector<12x128xf32>
    %80 = vector.shape_cast %77 : vector<12x128xf32> to vector<1x12x128xf32>
    tpu.vector_store %arg4[%c3_50, %c0_51, %c0_52], %80 {strides = array<i32>} : memref<4x12x128xf32, #tpu.memory_space<vmem>>, vector<1x12x128xf32>,
    return
  }
  func.func @transform_0(%arg0: i32, %arg1: i32) -> (i32, i32, i32) {
    %c0_i32 = arith.constant 0 : i32
    %c0_i32_0 = arith.constant 0 : i32
    return %arg0, %c0_i32, %arg1 : i32, i32, i32
  }
  func.func @transform_1(%arg0: i32, %arg1: i32) -> (i32, i32, i32) {
    %c0_i32 = arith.constant 0 : i32
    %c0_i32_0 = arith.constant 0 : i32
    return %arg0, %c0_i32, %arg1 : i32, i32, i32
  }
  func.func @transform_2(%arg0: i32, %arg1: i32) -> (i32, i32, i32) {
    %c0_i32 = arith.constant 0 : i32
    %c0_i32_0 = arith.constant 0 : i32
    %c0_i32_1 = arith.constant 0 : i32
    return %arg0, %c0_i32, %c0_i32_0 : i32, i32, i32
  }
}

</mosaic_0001>

<bundles_post_ra>
// kernel: tpu_custom_call.1
= control target key start
LH: loop header
LB: loop body
LE: loop exit
PB: predicated region body
PF: predicated region fallthrough
CT: control target
= control target key end

     0   :  { %7 = vsyncpa [#allocation3], 0  ;;  %s794_s0 = inlined_call_operand.hbm [shape: f32[4,4,256], index: 0, kind: input, shape index: {}]   ;;  %s795_s1 = inlined_call_operand.hbm [shape: s32[4,1,256], index: 1, kind: input, shape index: {}]   ;;  %s796_s2 = inlined_call_operand.vmem [shape: f32[4,12,128], index: 2, kind: output, shape index: {}]  }
   0x1   :  { %s13_s11 = sshll.u32 %s794_s0, 4  ;;  %s14_s11 = int_to_ptr.hbm [resolvable:$true] %s13_s11 }
   0x2   :  { %8 = vsyncpa [#allocation5], 0  ;;  %s481_s12 = smov [#allocation2]   ;;  %s26_s16 = sshll.u32 %s795_s1, 4  ;;  %s27_s16 = int_to_ptr.hbm [resolvable:$true] %s26_s16 }
   0x3   :  { %s15_s13 = sshll.u32 %s481_s12, 4  ;;  %s482_s17 = smov 128   ;;  %s16_s13 = int_to_ptr.vmem [resolvable:$true] %s15_s13 }
   0x4   :  { %s483_s18 = smov 8   ;;  %s484_s19 = smov [#allocation4]  }
   0x5   :  { %21 = dma.hbm_to_vmem [thread:$0]  %s14_s11, 512, %s16_s13, [#allocation3], %s482_s17, %s482_s17, %s483_s18  }
   0x6   :  { %s28_s20 = sshll.u32 %s484_s19, 4  ;;  %s485_s21 = smov 32   ;;  %s29_s20 = int_to_ptr.vmem [resolvable:$true] %s28_s20 }
   0x7   :  { %s486_s22 = smov 2  }
   0x8   :  { %34 = dma.hbm_to_vmem [thread:$0]  %s27_s16, 128, %s29_s20, [#allocation5], %s485_s21, %s485_s21, %s486_s22  }
   0x9   :  { %477 = dma.done.wait [#allocation3], 512  }
   0xa   :  { %478 = vsyncadd [#allocation3], 4294966784 }
   0xb   :  { %479 = dma.done.wait [#allocation5], 128  }
   0xc   :  { %480 = vsyncadd [#allocation5], 4294967168  ;;  %v487_v0 = vmov 1.0   ;;  %v57_v1 = vld [vmem:[#allocation2] sm:$0xff]  ;;  %v139_v5 = vld [vmem:[#allocation2 + $0x8] sm:$0xff]  ;;  %v55_v8 = vlaneseq  ;;  %vm83_vm2 = vcmask 1043456  }
   0xd   :  { %171 = vmatpush.msra.mxu2 %v487_v0  ;;  %194 = vmatpush.msra.mxu3 %v487_v0  ;;  %64 = vst [vmem:[#allocation1] ss:$2 sm:$0xff] %v57_v1  ;;  %v71_v2 = vmul.f32 %v57_v1, %v57_v1  ;;  %v141_v9 = vld [vmem:[#allocation4 + $0x2] sm:$0x3]  ;;  %v154_v10 = vmul.f32 %v139_v5, %v139_v5  ;;  %v58_v18 = vld [vmem:[#allocation4] sm:$0x3] }
   0xe   :  { %88 = vmatpush.msra.mxu0 %v487_v0  ;;  %111 = vmatpush.msra.mxu1 %v487_v0  ;;  %v578_v11 = vshrl.u32 %v55_v8, 7  ;;  %v142_v12 = vperm.slane %v141_v9, 0  ;;  %v143_v13 = vperm.slane %v141_v9, 1  ;;  %v222_v19 = vld [vmem:[#allocation2 + $0x10] sm:$0xff]  ;;  %v59_v22 = vperm.slane %v58_v18, 0  ;;  %v305_v37 = vld [vmem:[#allocation2 + $0x18] sm:$0xff] }
   0xf   :  { %172 = vmatpush.msra.mxu2 %v487_v0  ;;  %195 = vmatpush.msra.mxu3 %v487_v0  ;;  %v60_v23 = vperm.slane %v58_v18, 1  ;;  %v237_v30 = vmul.f32 %v222_v19, %v222_v19  ;;  %v224_v38 = vld [vmem:[#allocation4 + $0x4] sm:$0x3]  ;;  %v307_v43 = vld [vmem:[#allocation4 + $0x6] sm:$0x3]  ;;  %v320_v44 = vmul.f32 %v305_v37, %v305_v37  ;;  %v488_v63 = vmov 0.0  }
  0x10   :  { %89 = vmatpush.msra.mxu0 %v487_v0  ;;  %112 = vmatpush.msra.mxu1 %v487_v0  ;;  %vm591_vm0 = vcmp.eq.s32.totalorder %v142_v12, %v578_v11  ;;  %vm596_vm1 = vcmp.eq.s32.totalorder %v143_v13, %v578_v11  ;;  %vm623_vm3 = vcmp.eq.s32.totalorder %v59_v22, %v578_v11  ;;  %v225_v41 = vperm.slane %v224_v38, 0 }
  0x11   :  { %173 = vmatpush.msra.mxu2 %v487_v0  ;;  %196 = vmatpush.msra.mxu3 %v487_v0  ;;  %vm628_vm4 = vcmp.eq.s32.totalorder %v60_v23, %v578_v11  ;;  %v226_v42 = vperm.slane %v224_v38, 1  ;;  %v308_v45 = vperm.slane %v307_v43, 0  ;;  %v309_v46 = vperm.slane %v307_v43, 1  ;;  %48 = vst [vmem:[%s796_s2 + $0x8] sm:$0xf] %v488_v63 }
  0x12   :  { %90 = vmatpush.msra.mxu0 %v487_v0  ;;  %113 = vmatpush.msra.mxu1 %v487_v0  ;;  %vm685_vm5 = vcmp.eq.s32.totalorder %v225_v41, %v578_v11  ;;  %50 = vst [vmem:[%s796_s2 + $0x18] sm:$0xf] %v488_v63 }
  0x13   :  { %174 = vmatpush.msra.mxu2 %v487_v0  ;;  %197 = vmatpush.msra.mxu3 %v487_v0  ;;  %vm690_vm6 = vcmp.eq.s32.totalorder %v226_v42, %v578_v11  ;;  %vm711_vm7 = vcmp.eq.s32.totalorder %v308_v45, %v578_v11  ;;  %vm716_vm8 = vcmp.eq.s32.totalorder %v309_v46, %v578_v11 }
  0x14   :  { %91 = vmatpush.msra.mxu0 %v487_v0  ;;  %114 = vmatpush.msra.mxu1 %v487_v0  ;;  %v540_v3 = vld.sshfl [vmem:[#allocation1] sm:$0xff pattern:$0x75316420]  ;;  %v542_v4 = vld.sshfl [vmem:[#allocation1 + $0x8] sm:$0xff pattern:$0x75316420] }
  0x15   :  { %175 = vmatpush.msra.mxu2 %v487_v0  ;;  %198 = vmatpush.msra.mxu3 %v487_v0  ;;  %78 = vst [vmem:[#allocation1 + $0x1] ss:$2 sm:$0xff] %v71_v2  ;;  %v69_v31 = vsel %vm623_vm3, %v540_v3, 0.0  ;;  %v70_v32 = vsel %vm628_vm4, %v542_v4, 0.0 }
  0x16   :  { %92 = vmatpush.msra.mxu0 %v487_v0  ;;  %115 = vmatpush.msra.mxu1 %v487_v0  ;;  %52 = vst [vmem:[%s796_s2 + $0x28] sm:$0xf] %v488_v63 }
  0x17   :  { %176 = vmatpush.msra.mxu2 %v487_v0  ;;  %199 = vmatpush.msra.mxu3 %v487_v0  ;;  %54 = vst [vmem:[%s796_s2 + $0x38] sm:$0xf] %v488_v63 }
  0x18   :  { %93 = vmatpush.msra.mxu0 %v487_v0  ;;  %116 = vmatpush.msra.mxu1 %v487_v0 }
  0x19   :  { %177 = vmatpush.msra.mxu2 %v487_v0  ;;  %200 = vmatpush.msra.mxu3 %v487_v0 }
  0x1a   :  { %94 = vmatpush.msra.mxu0 %v487_v0  ;;  %117 = vmatpush.msra.mxu1 %v487_v0 }
  0x1b   :  { %178 = vmatpush.msra.mxu2 %v487_v0  ;;  %201 = vmatpush.msra.mxu3 %v487_v0 }
  0x1c   :  { %95 = vmatpush.msra.mxu0 %v487_v0  ;;  %118 = vmatpush.msra.mxu1 %v487_v0  ;;  %v560_v6 = vld.sshfl [vmem:[#allocation1] sm:$0xff pattern:$0x75316420]  ;;  %v562_v7 = vld.sshfl [vmem:[#allocation1 + $0x8] sm:$0xff pattern:$0x75316420] }
  0x1d   :  { %179 = vmatpush.msra.mxu2 %v487_v0  ;;  %202 = vmatpush.msra.mxu3 %v487_v0  ;;  %147 = vst [vmem:[#allocation1] ss:$2 sm:$0xff] %v139_v5  ;;  %v84_v35 = vsel %vm83_vm2, %v69_v31, %v560_v6  ;;  %v85_v36 = vsel %vm83_vm2, %v70_v32, %v562_v7  ;;  %v400_v7 = vld [vmem:[%s796_s2 + $0x18] sm:$0xf]  ;;  %v408_v23 = vld [vmem:[%s796_s2 + $0x28] sm:$0xf] }
  0x1e   :  { %96 = vmatpush.msra.mxu0 %v487_v0  ;;  %119 = vmatpush.msra.mxu1 %v487_v0  ;;  %v416_v28 = vld [vmem:[%s796_s2 + $0x38] sm:$0xf] }
  0x1f   :  { %180 = vmatpush.msra.mxu2 %v487_v0  ;;  %203 = vmatpush.msra.mxu3 %v487_v0 }
  0x20   :  { %97 = vmatpush.msra.mxu0 %v487_v0  ;;  %120 = vmatpush.msra.mxu1 %v487_v0 }
  0x21   :  { %181 = vmatpush.msra.mxu2 %v487_v0  ;;  %204 = vmatpush.msra.mxu3 %v487_v0 }
  0x22   :  { %98 = vmatpush.msra.mxu0 %v487_v0  ;;  %121 = vmatpush.msra.mxu1 %v487_v0 }
  0x23   :  { %182 = vmatpush.msra.mxu2 %v487_v0  ;;  %205 = vmatpush.msra.mxu3 %v487_v0 }
  0x24   :  { %99 = vmatpush.msra.mxu0 %v487_v0  ;;  %122 = vmatpush.msra.mxu1 %v487_v0  ;;  %v148_v14 = vld.sshfl [vmem:[#allocation1] sm:$0xff pattern:$0x75316420]  ;;  %v149_v15 = vld.sshfl [vmem:[#allocation1 + $0x8] sm:$0xff pattern:$0x75316420] }
  0x25   :  { %183 = vmatpush.msra.mxu2 %v487_v0  ;;  %206 = vmatpush.msra.mxu3 %v487_v0  ;;  %161 = vst [vmem:[#allocation1 + $0x1] ss:$2 sm:$0xff] %v154_v10  ;;  %v152_v20 = vsel %vm591_vm0, %v148_v14, 0.0  ;;  %v153_v21 = vsel %vm596_vm1, %v149_v15, 0.0  ;;  %v87_v10 = vld [vmem:[%s796_s2 + $0x8] sm:$0xf] }
  0x26   :  { %100 = vmatpush.msra.mxu0 %v487_v0  ;;  %123 = vmatpush.msra.mxu1 %v487_v0 }
  0x27   :  { %184 = vmatpush.msra.mxu2 %v487_v0  ;;  %207 = vmatpush.msra.mxu3 %v487_v0 }
  0x28   :  { %101 = vmatpush.msra.mxu0 %v487_v0  ;;  %124 = vmatpush.msra.mxu1 %v487_v0 }
  0x29   :  { %185 = vmatpush.msra.mxu2 %v487_v0  ;;  %208 = vmatpush.msra.mxu3 %v487_v0 }
  0x2a   :  { %102 = vmatpush.msra.mxu0 %v487_v0  ;;  %125 = vmatpush.msra.mxu1 %v487_v0 }
  0x2b   :  { %186 = vmatpush.msra.mxu2 %v487_v0  ;;  %209 = vmatpush.msra.mxu3 %v487_v0 }
  0x2c   :  { %103 = vmatpush.msra.mxu0 %v487_v0  ;;  %126 = vmatpush.msra.mxu1 %v487_v0  ;;  %v162_v24 = vld.sshfl [vmem:[#allocation1] sm:$0xff pattern:$0x75316420]  ;;  %v163_v25 = vld.sshfl [vmem:[#allocation1 + $0x8] sm:$0xff pattern:$0x75316420] }
  0x2d   :  { %337 = vmatpush.msrb.mxu2 %v487_v0  ;;  %360 = vmatpush.msrb.mxu3 %v487_v0  ;;  %230 = vst [vmem:[#allocation1] ss:$2 sm:$0xff] %v222_v19  ;;  %v166_v26 = vsel %vm83_vm2, %v152_v20, %v162_v24  ;;  %v167_v27 = vsel %vm83_vm2, %v153_v21, %v163_v25 }
  0x2e   :  { %254 = vmatpush.msrb.mxu0 %v487_v0  ;;  %277 = vmatpush.msrb.mxu1 %v487_v0 }
  0x2f   :  { %338 = vmatpush.msrb.mxu2 %v487_v0  ;;  %361 = vmatpush.msrb.mxu3 %v487_v0 }
  0x30   :  { %255 = vmatpush.msrb.mxu0 %v487_v0  ;;  %278 = vmatpush.msrb.mxu1 %v487_v0 }
  0x31   :  { %339 = vmatpush.msrb.mxu2 %v487_v0  ;;  %362 = vmatpush.msrb.mxu3 %v487_v0 }
  0x32   :  { %256 = vmatpush.msrb.mxu0 %v487_v0  ;;  %279 = vmatpush.msrb.mxu1 %v487_v0 }
  0x33   :  { %340 = vmatpush.msrb.mxu2 %v487_v0  ;;  %363 = vmatpush.msrb.mxu3 %v487_v0 }
  0x34   :  { %257 = vmatpush.msrb.mxu0 %v487_v0  ;;  %280 = vmatpush.msrb.mxu1 %v487_v0  ;;  %v642_v33 = vld.sshfl [vmem:[#allocation1] sm:$0xff pattern:$0x75316420]  ;;  %v644_v34 = vld.sshfl [vmem:[#allocation1 + $0x8] sm:$0xff pattern:$0x75316420] }
  0x35   :  { %341 = vmatpush.msrb.mxu2 %v487_v0  ;;  %364 = vmatpush.msrb.mxu3 %v487_v0  ;;  %244 = vst [vmem:[#allocation1 + $0x1] ss:$2 sm:$0xff] %v237_v30  ;;  %v235_v51 = vsel %vm685_vm5, %v642_v33, 0.0  ;;  %v236_v52 = vsel %vm690_vm6, %v644_v34, 0.0 }
  0x36   :  { %258 = vmatpush.msrb.mxu0 %v487_v0  ;;  %281 = vmatpush.msrb.mxu1 %v487_v0 }
  0x37   :  { %342 = vmatpush.msrb.mxu2 %v487_v0  ;;  %365 = vmatpush.msrb.mxu3 %v487_v0 }
  0x38   :  { %187 = vmatmul.f32.vlgmr.msra.gmra.mxu2 %v166_v26  ;;  %210 = vmatmul.f32.vlgmr.msra.gmra.mxu3 %v167_v27 }
  0x39   :  { %343 = vmatpush.msrb.mxu2 %v487_v0  ;;  %366 = vmatpush.msrb.mxu3 %v487_v0 }
  0x3a   :  { %259 = vmatpush.msrb.mxu0 %v487_v0  ;;  %282 = vmatpush.msrb.mxu1 %v487_v0 }
  0x3b   :  { %344 = vmatpush.msrb.mxu2 %v487_v0  ;;  %367 = vmatpush.msrb.mxu3 %v487_v0 }
  0x3c   :  { %260 = vmatpush.msrb.mxu0 %v487_v0  ;;  %283 = vmatpush.msrb.mxu1 %v487_v0  ;;  %v245_v39 = vld.sshfl [vmem:[#allocation1] sm:$0xff pattern:$0x75316420]  ;;  %v246_v40 = vld.sshfl [vmem:[#allocation1 + $0x8] sm:$0xff pattern:$0x75316420] }
  0x3d   :  { %345 = vmatpush.msrb.mxu2 %v487_v0  ;;  %368 = vmatpush.msrb.mxu3 %v487_v0  ;;  %313 = vst [vmem:[#allocation1] ss:$2 sm:$0xff] %v305_v37  ;;  %v249_v55 = vsel %vm83_vm2, %v235_v51, %v245_v39  ;;  %v250_v56 = vsel %vm83_vm2, %v236_v52, %v246_v40 }
  0x3e   :  { %261 = vmatpush.msrb.mxu0 %v487_v0  ;;  %284 = vmatpush.msrb.mxu1 %v487_v0 }
  0x3f   :  { %346 = vmatpush.msrb.mxu2 %v487_v0  ;;  %369 = vmatpush.msrb.mxu3 %v487_v0 }
  0x40   :  { %104 = vmatmul.f32.vlgmr.msra.gmra.mxu0 %v84_v35  ;;  %127 = vmatmul.f32.vlgmr.msra.gmra.mxu1 %v85_v36 }
  0x41   :  { %347 = vmatpush.msrb.mxu2 %v487_v0  ;;  %370 = vmatpush.msrb.mxu3 %v487_v0 }
  0x42   :  { %262 = vmatpush.msrb.mxu0 %v487_v0  ;;  %285 = vmatpush.msrb.mxu1 %v487_v0 }
  0x43   :  { %348 = vmatpush.msrb.mxu2 %v487_v0  ;;  %371 = vmatpush.msrb.mxu3 %v487_v0 }
  0x44   :  { %401 = vmatmul.msk.f32.gmra.mxu2 %vm591_vm0, %v487_v0  ;;  %402 = vmatmul.msk.f32.gmra.mxu3 %vm596_vm1, %v487_v0  ;;  %v314_v49 = vld.sshfl [vmem:[#allocation1] sm:$0xff pattern:$0x75316420]  ;;  %v315_v50 = vld.sshfl [vmem:[#allocation1 + $0x8] sm:$0xff pattern:$0x75316420] }
  0x45   :  { %263 = vmatpush.msrb.mxu0 %v487_v0  ;;  %286 = vmatpush.msrb.mxu1 %v487_v0  ;;  %327 = vst [vmem:[#allocation1 + $0x1] ss:$2 sm:$0xff] %v320_v44  ;;  %v318_v57 = vsel %vm711_vm7, %v314_v49, 0.0  ;;  %v319_v58 = vsel %vm716_vm8, %v315_v50, 0.0 }
  0x46   :  { %349 = vmatpush.msrb.mxu2 %v487_v0  ;;  %372 = vmatpush.msrb.mxu3 %v487_v0 }
  0x47   :  { %264 = vmatpush.msrb.mxu0 %v487_v0  ;;  %287 = vmatpush.msrb.mxu1 %v487_v0 }
  0x48   :  { %350 = vmatpush.msrb.mxu2 %v487_v0  ;;  %373 = vmatpush.msrb.mxu3 %v487_v0 }
  0x49   :  { %265 = vmatpush.msrb.mxu0 %v487_v0  ;;  %288 = vmatpush.msrb.mxu1 %v487_v0 }
  0x4a   :  { %351 = vmatpush.msrb.mxu2 %v487_v0  ;;  %374 = vmatpush.msrb.mxu3 %v487_v0 }
  0x4b   :  { %395 = vmatmul.msk.f32.gmra.mxu0 %vm623_vm3, %v487_v0  ;;  %396 = vmatmul.msk.f32.gmra.mxu1 %vm628_vm4, %v487_v0 }
  0x4c   :  { %266 = vmatpush.msrb.mxu0 %v487_v0  ;;  %289 = vmatpush.msrb.mxu1 %v487_v0  ;;  %v328_v59 = vld.sshfl [vmem:[#allocation1] sm:$0xff pattern:$0x75316420]  ;;  %v329_v60 = vld.sshfl [vmem:[#allocation1 + $0x8] sm:$0xff pattern:$0x75316420] }
  0x4d   :  { %352 = vmatpush.msrb.mxu2 %v487_v0  ;;  %375 = vmatpush.msrb.mxu3 %v487_v0  ;;  %v332_v61 = vsel %vm83_vm2, %v318_v57, %v328_v59  ;;  %v333_v62 = vsel %vm83_vm2, %v319_v58, %v329_v60 }
  0x4e   :  { %267 = vmatpush.msrb.mxu0 %v487_v0  ;;  %290 = vmatpush.msrb.mxu1 %v487_v0 }
  0x4f   :  { %353 = vmatmul.f32.vlgmr.msrb.gmra.mxu2 %v332_v61  ;;  %376 = vmatmul.f32.vlgmr.msrb.gmra.mxu3 %v333_v62 }
  0x50   :  { %268 = vmatpush.msrb.mxu0 %v487_v0  ;;  %291 = vmatpush.msrb.mxu1 %v487_v0 }
  0x52   :  { %269 = vmatpush.msrb.mxu0 %v487_v0  ;;  %292 = vmatpush.msrb.mxu1 %v487_v0 }
  0x53   :  { %270 = vmatmul.f32.vlgmr.msrb.gmra.mxu0 %v249_v55  ;;  %293 = vmatmul.f32.vlgmr.msrb.gmra.mxu1 %v250_v56 }
  0x57   :  { %417 = vmatmul.msk.f32.gmra.mxu2 %vm711_vm7, %v487_v0  ;;  %418 = vmatmul.msk.f32.gmra.mxu3 %vm716_vm8, %v487_v0 }
  0x5b   :  { %409 = vmatmul.msk.f32.gmra.mxu0 %vm685_vm5, %v487_v0  ;;  %410 = vmatmul.msk.f32.gmra.mxu1 %vm690_vm6, %v487_v0 }
  0xbb   :  { %v188_v1 = vpop.f32.mrf.mxu2  ;;  %v211_v2 = vpop.f32.mrf.mxu3 }
  0xbc   :  { %v212_v0 = vadd.f32 %v211_v2, %v188_v1 }
  0xbd   :  { %v105_v3 = vpop.f32.mrf.mxu0  ;;  %v128_v4 = vpop.f32.mrf.mxu1 }
  0xbe   :  { %v129_v5 = vadd.f32 %v128_v4, %v105_v3  ;;  %403 = vst [vmem:[%s796_s2 + $0x10] sm:$0xff] %v212_v0 }
  0xc0   :  { %136 = vst [vmem:[%s796_s2] sm:$0xff] %v129_v5 }
  0xc7   :  { %v191_v6 = vpop.f32.mrf.mxu2  ;;  %v214_v8 = vpop.f32.mrf.mxu3 }
  0xc8   :  { %v108_v9 = vpop.f32.mrf.mxu0  ;;  %v131_v11 = vpop.f32.mrf.mxu1  ;;  %v215_v12 = vadd.f32 %v214_v8, %v191_v6 }
  0xc9   :  { %v132_v13 = vadd.f32 %v131_v11, %v108_v9 }
  0xca   :  { %v218_v14 = vadd.f32 %v400_v7, %v215_v12 }
  0xcb   :  { %v135_v15 = vadd.f32 %v132_v13, %v87_v10 }
  0xcc   :  { %404 = vst [vmem:[%s796_s2 + $0x18] sm:$0xf] %v218_v14 }
  0xcd   :  { %137 = vst [vmem:[%s796_s2 + $0x8] sm:$0xf] %v135_v15 }
  0xd0   :  { %v271_v16 = vpop.f32.mrf.mxu0  ;;  %v294_v17 = vpop.f32.mrf.mxu1 }
  0xd1   :  { %v295_v18 = vadd.f32 %v294_v17, %v271_v16 }
  0xd2   :  { %v354_v19 = vpop.f32.mrf.mxu2  ;;  %v377_v20 = vpop.f32.mrf.mxu3 }
  0xd3   :  { %411 = vst [vmem:[%s796_s2 + $0x20] sm:$0xff] %v295_v18  ;;  %v378_v21 = vadd.f32 %v377_v20, %v354_v19 }
  0xd5   :  { %419 = vst [vmem:[%s796_s2 + $0x30] sm:$0xff] %v378_v21 }
  0xd8   :  { %v274_v22 = vpop.f32.mrf.mxu0  ;;  %v297_v24 = vpop.f32.mrf.mxu1 }
  0xd9   :  { %v298_v25 = vadd.f32 %v297_v24, %v274_v22 }
  0xda   :  { %v357_v27 = vpop.f32.mrf.mxu2  ;;  %v380_v29 = vpop.f32.mrf.mxu3 }
  0xdb   :  { %v301_v26 = vadd.f32 %v408_v23, %v298_v25  ;;  %v381_v30 = vadd.f32 %v380_v29, %v357_v27 }
  0xdd   :  { %412 = vst [vmem:[%s796_s2 + $0x28] sm:$0xf] %v301_v26  ;;  %v384_v31 = vadd.f32 %v416_v28, %v381_v30 }
  0xdf   :  { %420 = vst [vmem:[%s796_s2 + $0x38] sm:$0xf] %v384_v31 }
  0xe0   :  { %391 = vsyncpa [#allocation3], 1 }
  0xe1   :  { %392 = vsyncpa [#allocation5], 1 }

</bundles_post_ra>
